<compile_context>
chip_gen: v7x
topology: tpu7x:2x2x1
jax: 0.10.0
libtpu: 0.0.40
codegen_flags: <defaults>
</compile_context>

<pallas_src>
import functools

import jax
import jax.numpy as jnp
import numpy as np
from jax.experimental import pallas as pl
from jax.experimental.pallas import tpu as pltpu


def _discriminator_kernel(Ks, Co, L, dropout_p, train,
                          emb_ref, wall_ref, ball_ref, drop_ref, tmask_ref,
                          fcw_ref, fcb_ref, out_ref):
    """Fused conv-bank + ReLU + time-max + dropout + FC for one batch tile.

    emb_ref   : (Nt*L, D)    bf16  token embeddings, batch-major rows
    wall_ref  : (D, CF_pad)  bf16  fused (tap, conv, channel) filters
    ball_ref  : (1, CB)      f32   conv biases (concat in conv order)
    drop_ref  : (Nt, CB)     f32   dropout keep-mask (0/1)
    tmask_ref : (L, CB)      f32   per-conv time-validity mask (0/1)
    fcw_ref   : (CB, C_pad)  f32   FC weight, zero-padded output lanes
    fcb_ref   : (1, C_pad)   f32   FC bias, zero-padded
    out_ref   : (Nt, C_pad)  f32
    """
    n_convs = len(Ks)
    cb = n_convs * Co
    k_max = max(Ks)

    rows = emb_ref.shape[0]          # Nt * L (static)
    nt = rows // L

    # One lane-dense MXU matmul covering every (conv, tap) pair at once.
    p = jnp.dot(emb_ref[...], wall_ref[...],
                preferred_element_type=jnp.float32)           # (Nt*L, CF_pad) f32

    # Shifted tap accumulation on the VPU.  Shifting the flattened (Nt*L) axis
    # can pull rows across batch boundaries / past the tile end, but those
    # time positions are either zero-weighted taps or killed by tmask below.
    s = p[:, 0:cb]
    for k in range(1, k_max):
        pk = p[:, k * cb:(k + 1) * cb]
        shifted = jnp.concatenate(
            [pk[k:, :], jnp.zeros((k, cb), jnp.float32)], axis=0)
        s = s + shifted

    act = jnp.maximum(s + ball_ref[...], 0.0)                 # bias + ReLU
    act = act.reshape(nt, L, cb) * tmask_ref[...][None, :, :]  # mask invalid t
    feat = jnp.max(act, axis=1)                               # (Nt, CB) time max-pool

    if train and dropout_p > 0.0:
        # Inverted dropout with a precomputed {0,1} keep-mask.
        feat = feat * drop_ref[...] * (1.0 / (1.0 - dropout_p))

    logits = jnp.dot(feat, fcw_ref[...],
                     preferred_element_type=jnp.float32) + fcb_ref[...]
    out_ref[...] = logits.astype(out_ref.dtype)


def _pick_batch_tile(n, l, d, cf_pad, vmem_budget_bytes=24 * 1024 * 1024):
    """Batch rows per grid step, sized so the double-buffered bf16 emb tile plus
    the f32 matmul/accumulator/activation intermediates fit a v7x-safe budget."""
    per_row = 2 * (l * d * 2) + 3 * (l * cf_pad * 4)
    tile = int(vmem_budget_bytes // max(per_row, 1))
    if tile >= n:
        return n
    return max(8, (tile // 8) * 8)      # keep blocks sublane-aligned


def discriminator_forward(x_tokens, params, Ks, dropout_p, drop_mask, train=True):
    """Pallas forward of the Discriminator.  Returns (N, C) logits (f32)."""
    Ks = tuple(int(k) for k in Ks)
    embed = params["embed"]
    N, L = x_tokens.shape
    D = embed.shape[1]
    Co = params["conv_w"][0].shape[-1]
    C = params["fc_w"].shape[-1]
    n_convs = len(Ks)
    cb = n_convs * Co
    k_max = max(Ks)

    # Embedding gather kept as XLA glue.
    # TODO(synk): fuse the gather into the kernel via scalar-prefetched token
    # ids + per-row DMA once activation HBM traffic dominates.
    emb = jnp.take(embed, x_tokens, axis=0).astype(jnp.float32)     # (N, L, D)
    emb2d = emb.reshape(N * L, D).astype(jnp.bfloat16)              # MXU operand

    # Fuse every (tap k, conv ci) slice into one lane-dense matrix:
    # column k*CB + ci*Co + c  <-  conv_w[ci][k, :, c]  (zero if k >= Ks[ci]).
    blocks = []
    for k in range(k_max):
        cols = []
        for ci, K in enumerate(Ks):
            if k < K:
                cols.append(params["conv_w"][ci][k])                # (D, Co)
            else:
                cols.append(jnp.zeros((D, Co), jnp.float32))
        blocks.append(jnp.concatenate(cols, axis=1))                # (D, CB)
    w_all = jnp.concatenate(blocks, axis=1)                         # (D, k_max*CB)
    cf = w_all.shape[1]
    cf_pad = ((cf + 127) // 128) * 128
    w_all = jnp.pad(w_all, ((0, 0), (0, cf_pad - cf))).astype(jnp.bfloat16)

    b_all = jnp.concatenate(
        [b.reshape(1, Co) for b in params["conv_b"]], axis=1)       # (1, CB)

    # Per-conv time-validity mask: position t contributes iff t < L - K + 1.
    t_mask_np = np.zeros((L, cb), np.float32)
    for ci, K in enumerate(Ks):
        t_mask_np[: L - K + 1, ci * Co:(ci + 1) * Co] = 1.0
    t_mask = jnp.asarray(t_mask_np)

    # Lane-dense FC: pad the class dim to 128 output lanes, slice afterwards.
    c_pad = ((C + 127) // 128) * 128
    fc_w = jnp.pad(params["fc_w"].astype(jnp.float32),
                   ((0, 0), (0, c_pad - C)))                        # (CB, C_pad)
    fc_b = jnp.pad(params["fc_b"].astype(jnp.float32).reshape(1, C),
                   ((0, 0), (0, c_pad - C)))                        # (1, C_pad)

    drop_mask = drop_mask.astype(jnp.float32)                       # (N, CB)

    n_tile = _pick_batch_tile(N, L, D, cf_pad)
    grid = (pl.cdiv(N, n_tile),)

    kernel = functools.partial(
        _discriminator_kernel, Ks, int(Co), int(L), float(dropout_p), bool(train))

    out = pl.pallas_call(
        kernel,
        out_shape=jax.ShapeDtypeStruct((N, c_pad), jnp.float32),
        grid=grid,
        in_specs=[
            pl.BlockSpec((n_tile * L, D), lambda i: (i, 0)),        # emb rows (bf16)
            pl.BlockSpec((D, cf_pad), lambda i: (0, 0)),            # fused conv weights
            pl.BlockSpec((1, cb), lambda i: (0, 0)),                # conv biases
            pl.BlockSpec((n_tile, cb), lambda i: (i, 0)),           # dropout keep-mask
            pl.BlockSpec((L, cb), lambda i: (0, 0)),                # time-validity mask
            pl.BlockSpec((cb, c_pad), lambda i: (0, 0)),            # FC weight
            pl.BlockSpec((1, c_pad), lambda i: (0, 0)),             # FC bias
        ],
        out_specs=pl.BlockSpec((n_tile, c_pad), lambda i: (i, 0)),
        compiler_params=pltpu.CompilerParams(
            dimension_semantics=("parallel",),
            vmem_limit_bytes=48 * 1024 * 1024),
    )(emb2d, w_all, b_all, drop_mask, t_mask, fc_w, fc_b)

    return out[:, :C]


def init_params(key, V, D, C, Co, Ks):
    keys = jax.random.split(key, 3 + len(Ks))
    params = {
        "embed": jax.random.normal(keys[0], (V, D), jnp.float32) * 0.1,
        "conv_w": [],
        "conv_b": [],
        "fc_w": jax.random.normal(keys[1], (len(Ks) * Co, C), jnp.float32) * 0.1,
        "fc_b": jax.random.normal(keys[2], (1, C), jnp.float32) * 0.1,
    }
    for i, K in enumerate(Ks):
        params["conv_w"].append(
            jax.random.normal(keys[3 + i], (K, D, Co), jnp.float32) * 0.1)
        params["conv_b"].append(
            jnp.full((1, Co), 0.01 * (i + 1), jnp.float32))
    return params


def reference_forward(x_tokens, params, Ks, dropout_p, drop_mask, train=True):
    """Pure-JAX f32 reference mirroring the PyTorch forward semantics."""
    emb = jnp.take(params["embed"], x_tokens, axis=0).astype(jnp.float32)
    N, L, D = emb.shape
    feats = []
    for w, b, K in zip(params["conv_w"], params["conv_b"], Ks):
        T = L - K + 1
        acc = jnp.zeros((N, T, w.shape[-1]), jnp.float32)
        for k in range(K):
            acc = acc + jnp.einsum("ntd,dc->ntc", emb[:, k:k + T, :], w[k],
                                   precision="highest")
        acc = jax.nn.relu(acc + b)
        feats.append(acc.max(axis=1))
    feat = jnp.concatenate(feats, axis=1)
    if train and dropout_p > 0.0:
        feat = feat * drop_mask / (1.0 - dropout_p)
    return jnp.dot(feat, params["fc_w"], precision="highest") + params["fc_b"]


if __name__ == "__main__":
    # Small config: embed_num=50, embed_dim=32, class_num=4, kernel_num=8,
    # kernel_sizes=(3,4,5), dropout=0.5; batch N=2, sequence length L=16.
    V, D, C, Co = 50, 32, 4, 8
    Ks = (3, 4, 5)
    dropout_p = 0.5
    N, L = 2, 16

    root = jax.random.PRNGKey(0)
    k_params, k_tokens, k_drop = jax.random.split(root, 3)

    params = init_params(k_params, V, D, C, Co, Ks)
    x = jax.random.randint(k_tokens, (N, L), 0, V, jnp.int32)

    # Deterministic dropout keep-mask (train=True path); PyTorch's dropout RNG
    # is not reproduced bit-for-bit — the mask is synthetic but semantics match.
    mask = jax.random.bernoulli(k_drop, 1.0 - dropout_p,
                                (N, len(Ks) * Co)).astype(jnp.float32)

    logits = discriminator_forward(x, params, Ks, dropout_p, mask, train=True)
    logits = jax.block_until_ready(logits)

    ref = reference_forward(x, params, Ks, dropout_p, mask, train=True)
    assert logits.shape == (N, C)
    # bf16 MXU operands (f32 accumulate) => compare at ~1e-2 tolerance.
    np.testing.assert_allclose(np.asarray(logits), np.asarray(ref),
                               rtol=2e-2, atol=2e-2)
    print("KERNEL_OK")
</pallas_src>

<mosaic_0001>
module attributes {stable_mosaic.version = 11 : i64} {
  func.func @_discriminator_kernel(%arg0: i32, %arg1: memref<32x32xbf16, #tpu.memory_space<vmem>>, %arg2: memref<32x128xbf16, #tpu.memory_space<vmem>>, %arg3: memref<1x24xf32, #tpu.memory_space<vmem>>, %arg4: memref<2x24xf32, #tpu.memory_space<vmem>>, %arg5: memref<16x24xf32, #tpu.memory_space<vmem>>, %arg6: memref<24x128xf32, #tpu.memory_space<vmem>>, %arg7: memref<1x128xf32, #tpu.memory_space<vmem>>, %arg8: memref<2x128xf32, #tpu.memory_space<vmem>>) attributes {dimension_semantics = [#tpu.dimension_semantics<parallel>], iteration_bounds = array<i64: 1>, scalar_prefetch = 0 : i64, scratch_operands = 0 : i64, tpu.core_type = #tpu.core_type<tc>, window_params = [{transform_indices = @transform_0, window_bounds = array<i64: 32, 32>}, {pipeline_mode = #tpu.pipeline_mode<synchronous>, transform_indices = @transform_1, window_bounds = array<i64: 32, 128>}, {pipeline_mode = #tpu.pipeline_mode<synchronous>, transform_indices = @transform_2, window_bounds = array<i64: 1, 24>}, {transform_indices = @transform_3, window_bounds = array<i64: 2, 24>}, {pipeline_mode = #tpu.pipeline_mode<synchronous>, transform_indices = @transform_4, window_bounds = array<i64: 16, 24>}, {pipeline_mode = #tpu.pipeline_mode<synchronous>, transform_indices = @transform_5, window_bounds = array<i64: 24, 128>}, {pipeline_mode = #tpu.pipeline_mode<synchronous>, transform_indices = @transform_6, window_bounds = array<i64: 1, 128>}, {transform_indices = @transform_7, window_bounds = array<i64: 2, 128>}]} {
    %c0 = arith.constant 0 : index
    %c0_0 = arith.constant 0 : index
    %0 = vector.load %arg1[%c0, %c0_0] : memref<32x32xbf16, #tpu.memory_space<vmem>>, vector<32x32xbf16>
    %c0_1 = arith.constant 0 : index
    %c0_2 = arith.constant 0 : index
    %1 = vector.load %arg2[%c0_1, %c0_2] : memref<32x128xbf16, #tpu.memory_space<vmem>>, vector<32x128xbf16>
    %cst = arith.constant dense<0.000000e+00> : vector<32x128xf32>
    %2 = tpu.matmul %0, %1, %cst {dimension_numbers = #tpu.dot_dimension_numbers<[1], [0], [0], [1], [0, 0, 1, 1], [], []>} : vector<32x32xbf16>, vector<32x128xbf16>, vector<32x128xf32> -> vector<32x128xf32>
    %3 = vector.extract_strided_slice %2 {offsets = [0, 0], sizes = [32, 24], strides = [1, 1]} : vector<32x128xf32> to vector<32x24xf32>
    %4 = vector.extract_strided_slice %2 {offsets = [0, 24], sizes = [32, 24], strides = [1, 1]} : vector<32x128xf32> to vector<32x24xf32>
    %5 = vector.extract_strided_slice %4 {offsets = [1, 0], sizes = [31, 24], strides = [1, 1]} : vector<32x24xf32> to vector<31x24xf32>
    %cst_3 = arith.constant 0.000000e+00 : f32
    %6 = vector.broadcast %cst_3 : f32 to vector<1x24xf32>
    %7 = tpu.concatenate %5, %6 in 0 : vector<31x24xf32>, vector<1x24xf32> -> vector<32x24xf32>
    %8 = arith.addf %3, %7 : vector<32x24xf32>
    %9 = vector.extract_strided_slice %2 {offsets = [0, 48], sizes = [32, 24], strides = [1, 1]} : vector<32x128xf32> to vector<32x24xf32>
    %10 = vector.extract_strided_slice %9 {offsets = [2, 0], sizes = [30, 24], strides = [1, 1]} : vector<32x24xf32> to vector<30x24xf32>
    %cst_4 = arith.constant 0.000000e+00 : f32
    %11 = vector.broadcast %cst_4 : f32 to vector<2x24xf32>
    %12 = tpu.concatenate %10, %11 in 0 : vector<30x24xf32>, vector<2x24xf32> -> vector<32x24xf32>
    %13 = arith.addf %8, %12 : vector<32x24xf32>
    %14 = vector.extract_strided_slice %2 {offsets = [0, 72], sizes = [32, 24], strides = [1, 1]} : vector<32x128xf32> to vector<32x24xf32>
    %15 = vector.extract_strided_slice %14 {offsets = [3, 0], sizes = [29, 24], strides = [1, 1]} : vector<32x24xf32> to vector<29x24xf32>
    %cst_5 = arith.constant 0.000000e+00 : f32
    %16 = vector.broadcast %cst_5 : f32 to vector<3x24xf32>
    %17 = tpu.concatenate %15, %16 in 0 : vector<29x24xf32>, vector<3x24xf32> -> vector<32x24xf32>
    %18 = arith.addf %13, %17 : vector<32x24xf32>
    %19 = vector.extract_strided_slice %2 {offsets = [0, 96], sizes = [32, 24], strides = [1, 1]} : vector<32x128xf32> to vector<32x24xf32>
    %20 = vector.extract_strided_slice %19 {offsets = [4, 0], sizes = [28, 24], strides = [1, 1]} : vector<32x24xf32> to vector<28x24xf32>
    %cst_6 = arith.constant 0.000000e+00 : f32
    %21 = vector.broadcast %cst_6 : f32 to vector<4x24xf32>
    %22 = tpu.concatenate %20, %21 in 0 : vector<28x24xf32>, vector<4x24xf32> -> vector<32x24xf32>
    %23 = arith.addf %18, %22 : vector<32x24xf32>
    %c0_7 = arith.constant 0 : index
    %c0_8 = arith.constant 0 : index
    %24 = vector.load %arg3[%c0_7, %c0_8] : memref<1x24xf32, #tpu.memory_space<vmem>>, vector<1x24xf32>
    %25 = vector.broadcast %24 : vector<1x24xf32> to vector<32x24xf32>
    %26 = arith.addf %23, %25 : vector<32x24xf32>
    %cst_9 = arith.constant 0.000000e+00 : f32
    %27 = vector.broadcast %cst_9 : f32 to vector<32x24xf32>
    %28 = arith.maximumf %26, %27 : vector<32x24xf32>
    %29 = vector.shape_cast %28 : vector<32x24xf32> to vector<2x16x24xf32>
    %c0_10 = arith.constant 0 : index
    %c0_11 = arith.constant 0 : index
    %30 = vector.load %arg5[%c0_10, %c0_11] : memref<16x24xf32, #tpu.memory_space<vmem>>, vector<16x24xf32>
    %31 = vector.shape_cast %30 : vector<16x24xf32> to vector<1x16x24xf32>
    %32 = vector.broadcast %31 : vector<1x16x24xf32> to vector<2x16x24xf32>
    %33 = arith.mulf %29, %32 : vector<2x16x24xf32>
    %cst_12 = arith.constant dense<0xFF800000> : vector<2x24xf32>
    %34 = vector.multi_reduction <maximumf>, %33, %cst_12 [1] : vector<2x16x24xf32> to vector<2x24xf32>
    %c0_13 = arith.constant 0 : index
    %c0_14 = arith.constant 0 : index
    %35 = vector.load %arg4[%c0_13, %c0_14] : memref<2x24xf32, #tpu.memory_space<vmem>>, vector<2x24xf32>
    %36 = arith.mulf %34, %35 : vector<2x24xf32>
    %cst_15 = arith.constant 2.000000e+00 : f32
    %37 = vector.broadcast %cst_15 : f32 to vector<2x24xf32>
    %38 = arith.mulf %36, %37 : vector<2x24xf32>
    %c0_16 = arith.constant 0 : index
    %c0_17 = arith.constant 0 : index
    %39 = vector.load %arg6[%c0_16, %c0_17] : memref<24x128xf32, #tpu.memory_space<vmem>>, vector<24x128xf32>
    %cst_18 = arith.constant dense<0.000000e+00> : vector<2x128xf32>
    %40 = tpu.matmul %38, %39, %cst_18 {dimension_numbers = #tpu.dot_dimension_numbers<[1], [0], [0], [1], [0, 0, 1, 1], [], []>} : vector<2x24xf32>, vector<24x128xf32>, vector<2x128xf32> -> vector<2x128xf32>
    %c0_19 = arith.constant 0 : index
    %c0_20 = arith.constant 0 : index
    %41 = vector.load %arg7[%c0_19, %c0_20] : memref<1x128xf32, #tpu.memory_space<vmem>>, vector<1x128xf32>
    %42 = vector.broadcast %41 : vector<1x128xf32> to vector<2x128xf32>
    %43 = arith.addf %40, %42 : vector<2x128xf32>
    %c0_21 = arith.constant 0 : index
    %c0_22 = arith.constant 0 : index
    %44 = vector.load %arg8[%c0_21, %c0_22] : memref<2x128xf32, #tpu.memory_space<vmem>>, vector<2x128xf32>
    tpu.vector_store %arg8[%c0_21, %c0_22], %43 {strides = array<i32>} : memref<2x128xf32, #tpu.memory_space<vmem>>, vector<2x128xf32>,
    return
  }
  func.func @transform_0(%arg0: i32) -> (i32, i32) {
    %c0_i32 = arith.constant 0 : i32
    %c0_i32_0 = arith.constant 0 : i32
    return %arg0, %c0_i32 : i32, i32
  }
  func.func @transform_1(%arg0: i32) -> (i32, i32) {
    %c0_i32 = arith.constant 0 : i32
    %c0_i32_0 = arith.constant 0 : i32
    %c0_i32_1 = arith.constant 0 : i32
    return %c0_i32, %c0_i32_0 : i32, i32
  }
  func.func @transform_2(%arg0: i32) -> (i32, i32) {
    %c0_i32 = arith.constant 0 : i32
    %c0_i32_0 = arith.constant 0 : i32
    %c0_i32_1 = arith.constant 0 : i32
    return %c0_i32, %c0_i32_0 : i32, i32
  }
  func.func @transform_3(%arg0: i32) -> (i32, i32) {
    %c0_i32 = arith.constant 0 : i32
    %c0_i32_0 = arith.constant 0 : i32
    return %arg0, %c0_i32 : i32, i32
  }
  func.func @transform_4(%arg0: i32) -> (i32, i32) {
    %c0_i32 = arith.constant 0 : i32
    %c0_i32_0 = arith.constant 0 : i32
    %c0_i32_1 = arith.constant 0 : i32
    return %c0_i32, %c0_i32_0 : i32, i32
  }
  func.func @transform_5(%arg0: i32) -> (i32, i32) {
    %c0_i32 = arith.constant 0 : i32
    %c0_i32_0 = arith.constant 0 : i32
    %c0_i32_1 = arith.constant 0 : i32
    return %c0_i32, %c0_i32_0 : i32, i32
  }
  func.func @transform_6(%arg0: i32) -> (i32, i32) {
    %c0_i32 = arith.constant 0 : i32
    %c0_i32_0 = arith.constant 0 : i32
    %c0_i32_1 = arith.constant 0 : i32
    return %c0_i32, %c0_i32_0 : i32, i32
  }
  func.func @transform_7(%arg0: i32) -> (i32, i32) {
    %c0_i32 = arith.constant 0 : i32
    %c0_i32_0 = arith.constant 0 : i32
    return %arg0, %c0_i32 : i32, i32
  }
}

</mosaic_0001>

<bundles_post_ra>
// kernel: tpu_custom_call.1
= control target key start
LH: loop header
LB: loop body
LE: loop exit
PB: predicated region body
PF: predicated region fallthrough
CT: control target
= control target key end

     0   :  { %12 = vsyncpa [#allocation3], 0  ;;  %s791_s0 = inlined_call_operand.hbm [shape: bf16[32,32], index: 0, kind: input, shape index: {}]   ;;  %s792_s1 = inlined_call_operand.hbm [shape: bf16[32,128], index: 1, kind: input, shape index: {}]   ;;  %s793_s2 = inlined_call_operand.vmem [shape: f32[1,24], index: 2, kind: input, shape index: {}]   ;;  %s794_s3 = inlined_call_operand.vmem [shape: f32[2,24], index: 3, kind: input, shape index: {}]   ;;  %s795_s4 = inlined_call_operand.hbm [shape: f32[16,24], index: 4, kind: input, shape index: {}]   ;;  %s796_s5 = inlined_call_operand.hbm [shape: f32[24,128], index: 5, kind: input, shape index: {}]   ;;  %s797_s6 = inlined_call_operand.vmem [shape: f32[1,128], index: 6, kind: input, shape index: {}]   ;;  %s798_s7 = inlined_call_operand.hbm [shape: f32[2,128], index: 7, kind: output, shape index: {}]  }
   0x1   :  { %13 = vsyncpa [#allocation6], 0 }
   0x2   :  { %14 = vsyncpa [#allocation9], 0 }
   0x3   :  { %15 = vsyncpa [#allocation4], 0  ;;  %s610_s24 = smov [#allocation5]   ;;  %s611_s26 = smov [#allocation2]  }
   0x4   :  { %s33_s25 = sshll.u32 %s610_s24, 4  ;;  %s21_s27 = sshll.u32 %s611_s26, 4  ;;  %s34_s25 = int_to_ptr.vmem [resolvable:$true] %s33_s25  ;;  %s666_s27 = int_to_ptr.vmem [resolvable:$true] %s21_s27 }
   0x5   :  { %s492_s30 = scalar_lea.hbm %s792_s1, 256 }
   0x6   :  { %p493_p0 = scmp.ne.s32.totalorder %s792_s1, %s492_s30  ;;  %p496_p1 = scmp.lt.u32.totalorder %s492_s30, %s792_s1 }
   0x8   :  { %p498_p2 = pnand %p496_p1, %p493_p0 }
   0xa   :  { %501 = shalt.err (!%p498_p2)
}
   0xb   :  { %s502_s12 = scalar_lea.vmem %s34_s25, 256  ;;  %p507_p4 = scmp.lt.s32.totalorder %s34_s25, %s34_s25 }
   0xc   :  { %p503_p3 = scmp.ne.s32.totalorder %s34_s25, %s502_s12  ;;  %p508_p5 = scmp.lt.s32.totalorder %s502_s12, %s502_s12 }
   0xe   :  { %p509_p6 = por %p508_p5, %p507_p4 }
  0x10   :  { %p510_p7 = pnand %p509_p6, %p503_p3 }
  0x12   :  { %513 = shalt.err (!%p510_p7)
}
  0x13   :  { %s612_s13 = smov 64   ;;  %s613_s14 = smov 4  }
  0x14   :  { %39 = dma.hbm_to_vmem [thread:$0]  %s792_s1, 256, %s34_s25, [#allocation6], %s612_s13, %s612_s13, %s613_s14  }
  0x15   :  { %s514_s19 = scalar_lea.hbm %s791_s0, 256 }
  0x16   :  { %p515_p8 = scmp.ne.s32.totalorder %s791_s0, %s514_s19  ;;  %p518_p9 = scmp.lt.u32.totalorder %s514_s19, %s791_s0 }
  0x18   :  { %p520_p10 = pnand %p518_p9, %p515_p8 }
  0x1a   :  { %523 = shalt.err (!%p520_p10)
}
  0x1b   :  { %s524_s24 = scalar_lea.vmem %s666_s27, 256  ;;  %p529_p12 = scmp.lt.s32.totalorder %s666_s27, %s666_s27 }
  0x1c   :  { %p525_p11 = scmp.ne.s32.totalorder %s666_s27, %s524_s24  ;;  %p530_p13 = scmp.lt.s32.totalorder %s524_s24, %s524_s24 }
  0x1e   :  { %p531_p0 = por %p530_p13, %p529_p12 }
  0x20   :  { %p532_p1 = pnand %p531_p0, %p525_p11 }
  0x22   :  { %535 = shalt.err (!%p532_p1)
}
  0x23   :  { %27 = dma.hbm_to_vmem [thread:$0]  %s791_s0, 256, %s666_s27, [#allocation3], %s612_s13, %s612_s13, %s613_s14  }
  0x24   :  { %s614_s26 = smov [#allocation7]   ;;  %s536_s8 = scalar_lea.hbm %s795_s4, 256 }
  0x25   :  { %s49_s28 = sshll.u32 %s614_s26, 4  ;;  %p537_p2 = scmp.ne.s32.totalorder %s795_s4, %s536_s8  ;;  %s50_s28 = int_to_ptr.vmem [resolvable:$true] %s49_s28 }
  0x26   :  { %p540_p3 = scmp.lt.u32.totalorder %s536_s8, %s795_s4 }
  0x28   :  { %p542_p4 = pnand %p540_p3, %p537_p2 }
  0x2a   :  { %545 = shalt.err (!%p542_p4)
}
  0x2b   :  { %s546_s15 = scalar_lea.vmem %s50_s28, 256  ;;  %p551_p6 = scmp.lt.s32.totalorder %s50_s28, %s50_s28 }
  0x2c   :  { %p547_p5 = scmp.ne.s32.totalorder %s50_s28, %s546_s15  ;;  %p552_p7 = scmp.lt.s32.totalorder %s546_s15, %s546_s15 }
  0x2e   :  { %p553_p8 = por %p552_p7, %p551_p6 }
  0x30   :  { %p554_p9 = pnand %p553_p8, %p547_p5 }
  0x32   :  { %557 = shalt.err (!%p554_p9)
}
  0x33   :  { %s615_s0 = smov 128   ;;  %s616_s27 = smov 8  }
  0x34   :  { %55 = dma.hbm_to_vmem [thread:$0]  %s795_s4, 256, %s50_s28, [#allocation6], %s615_s0, %s615_s0, %s616_s27  }
  0x35   :  { %s617_s16 = smov [#allocation8]   ;;  %s558_s20 = scalar_lea.hbm %s796_s5, 384 }
  0x36   :  { %s61_s17 = sshll.u32 %s617_s16, 4  ;;  %p559_p10 = scmp.ne.s32.totalorder %s796_s5, %s558_s20  ;;  %s62_s17 = int_to_ptr.vmem [resolvable:$true] %s61_s17 }
  0x37   :  { %p562_p11 = scmp.lt.u32.totalorder %s558_s20, %s796_s5 }
  0x39   :  { %p564_p12 = pnand %p562_p11, %p559_p10 }
  0x3b   :  { %567 = shalt.err (!%p564_p12)
}
  0x3c   :  { %s568_s1 = scalar_lea.vmem %s62_s17, 384  ;;  %p573_p0 = scmp.lt.s32.totalorder %s62_s17, %s62_s17 }
  0x3d   :  { %p569_p13 = scmp.ne.s32.totalorder %s62_s17, %s568_s1  ;;  %p574_p1 = scmp.lt.s32.totalorder %s568_s1, %s568_s1 }
  0x3f   :  { %p575_p2 = por %p574_p1, %p573_p0 }
  0x41   :  { %p576_p3 = pnand %p575_p2, %p569_p13 }
  0x43   :  { %579 = shalt.err (!%p576_p3)
}
  0x44   :  { %67 = dma.hbm_to_vmem [thread:$0]  %s796_s5, 384, %s62_s17, [#allocation9], %s615_s0, %s615_s0, %s616_s27  }
  0x45   :  { %602 = dma.done.wait [#allocation3], 256  }
  0x46   :  { %603 = vsyncadd [#allocation3], 4294967040 }
  0x47   :  { %604 = dma.done.wait [#allocation6], 512  }
  0x48   :  { %605 = vsyncadd [#allocation6], 4294966784 }
  0x49   :  { %606 = dma.done.wait [#allocation9], 384  }
  0x4a   :  { %607 = vsyncadd [#allocation9], 4294966912  ;;  %v488_v0 = vld [vmem:[#allocation5] sm:$0xff]   ;;  %v489_v1 = vld [vmem:[#allocation5 + $0x8] sm:$0xff]   ;;  %vm113_vm0 = vcmask 261120   ;;  %vm200_vm1 = vcmask 1045504  }
  0x4b   :  { %452 = vmatprep.subr.bf16.mxu0 %v488_v0  ;;  %v490_v2 = vld [vmem:[#allocation2] sm:$0xff]   ;;  %v491_v3 = vld [vmem:[#allocation2 + $0x8] sm:$0xff]   ;;  %vm173_vm2 = vcmask 1046528   ;;  %vm227_vm3 = vcmask 1044480   ;;  %vm254_vm4 = vcmask 1043456   ;;  %s618_s5 = smov 80  }
  0x4c   :  { %453 = vmatpush3.bf16.msra.mxu0 %v488_v0  ;;  %456 = vmatprep.mubr.msk.bf16.mxu0 %vm113_vm0, %v490_v2  ;;  %s619_s26 = smov 104   ;;  %s620_s28 = smov 56   ;;  %v330_v40 = vld [vmem:[#allocation8] sm:$0xff]  ;;  %v331_v41 = vld [vmem:[#allocation8 + $0x8] sm:$0xff]  ;;  %v622_v42 = vmov 0.0|0.0   ;;  %vm623_vm5 = vmmov 0  }
  0x4d   :  { %454 = vmatprep.subr.bf16.mxu0 %v489_v1  ;;  %s621_s29 = smov 32   ;;  %469 = vmatprep.subr.bf16.mxu1 %v622_v42  ;;  %v470_v43 = vpack.c.bf16 %v331_v41, %v330_v40  ;;  %v624_v44 = vmov 0.0   ;;  %v332_v45 = vld [vmem:[#allocation8 + $0x10] sm:$0xff]  ;;  %vm302_vm6 = vcmask 195584   ;;  %vm343_vm7 = vcmask 1041409  }
  0x4e   :  { %466 = vmatprep.mubr.msk.f32.mxu1 %vm623_vm5, %v624_v44  ;;  %v441_v55 = vld [vmem:[%s793_s2] ss:$0 sm:$0xff] }
  0x4f   :  { %471 = vmatpush3.bf16.msra.mxu1 %v470_v43  ;;  %v321_v40 = vld [vmem:[%s794_s3] sm:$0x3]  ;;  %s625_s3 = smov [#allocation10]  }
  0x50   :  { %455 = vmatpush3.bf16.msra.mxu0 %v489_v1  ;;  %464 = vmatprep.subr.mxu1 %v624_v44  ;;  %v323_v44 = vrot.slane %v321_v40, 1  ;;  %s424_s12 = sshll.u32 %s625_s3, 4  ;;  %s425_s12 = int_to_ptr.vmem [resolvable:$true] %s424_s12 }
  0x51   :  { %s580_s15 = scalar_lea.vmem %s425_s12, 32  ;;  %p585_p5 = scmp.lt.s32.totalorder %s425_s12, %s425_s12 }
  0x52   :  { %p581_p4 = scmp.ne.s32.totalorder %s425_s12, %s580_s15  ;;  %p586_p6 = scmp.lt.s32.totalorder %s580_s15, %s580_s15 }
  0x53   :  { %457 = vmatmul.mubr.msk.bf16.vlgmr.msra.gmra.mrb[0].mxu0 %vm113_vm0, %v491_v3  ;;  %465 = vmatpush3.msra.mxu1 %v332_v45  ;;  %v297_v3 = vld [vmem:[#allocation7 + $0x8] sm:$0xff] }
  0x54   :  { %p587_p7 = por %p586_p6, %p585_p5 }
  0x56   :  { %p588_p8 = pnand %p587_p7, %p581_p4 }
 0x126   :  { %v721_v4 = vpop.f32.mrb[0].mxu0 }
 0x127   :  { %v723_v5 = vpop.f32.mrb[1].mxu0  ;;  %v177_v6 = vrot.slane %v721_v4, 1  ;;  %v204_v8 = vrot.slane %v721_v4, 2  ;;  %v231_v9 = vrot.slane %v721_v4, 3  ;;  %v258_v11 = vrot.slane %v721_v4, 4 }
 0x128   :  { %v726_v7 = vpop.f32.mrb[2].mxu0  ;;  %v174_v10 = vrot.slane %v723_v5, 1  ;;  %v201_v23 = vrot.slane %v723_v5, 2  ;;  %v228_v24 = vrot.slane %v723_v5, 3  ;;  %v255_v28 = vrot.slane %v723_v5, 4 }
 0x129   :  { %v732_v12 = vpop.f32.mrb[3].mxu0  ;;  %v206_v13 = vrot.slane %v726_v7, 2  ;;  %v179_v14 = vrot.slane %v726_v7, 1  ;;  %v233_v15 = vrot.slane %v726_v7, 3  ;;  %v260_v16 = vrot.slane %v726_v7, 4 }
 0x12a   :  { %v175_v17 = vrot.slane %v732_v12, 1  ;;  %v202_v18 = vrot.slane %v732_v12, 2  ;;  %v229_v19 = vrot.slane %v732_v12, 3  ;;  %v256_v20 = vrot.slane %v732_v12, 4 }
 0x12b   :  { %v209_v21 = vsel %vm200_vm1, %v206_v13, 0.0  ;;  %v180_v22 = vsel %vm173_vm2, %v177_v6, %v179_v14  ;;  %v207_v25 = vsel %vm200_vm1, %v204_v8, %v206_v13  ;;  %v234_v26 = vsel %vm227_vm3, %v231_v9, %v233_v15 }
 0x12c   :  { %217 = vrot.lane.b32.xlu1 %v209_v21, %s618_s5  ;;  %188 = vrot.lane.b32.xlu0 %v180_v22, %s619_s26  ;;  %v176_v27 = vsel %vm173_vm2, %v174_v10, %v175_v17  ;;  %v261_v29 = vsel %vm254_vm4, %v258_v11, %v260_v16  ;;  %v178_v30 = vsel %vm173_vm2, %v175_v17, %v177_v6  ;;  %v236_v37 = vsel %vm227_vm3, %v233_v15, 0.0 }
 0x12d   :  { %v203_v31 = vsel %vm200_vm1, %v201_v23, %v202_v18  ;;  %v205_v32 = vsel %vm200_vm1, %v202_v18, %v204_v8  ;;  %v230_v33 = vsel %vm227_vm3, %v228_v24, %v229_v19  ;;  %v232_v34 = vsel %vm227_vm3, %v229_v19, %v231_v9 }
 0x12e   :  { %v257_v35 = vsel %vm254_vm4, %v255_v28, %v256_v20  ;;  %v259_v36 = vsel %vm254_vm4, %v256_v20, %v258_v11  ;;  %v182_v38 = vsel %vm173_vm2, %v179_v14, 0.0  ;;  %v263_v39 = vsel %vm254_vm4, %v260_v16, 0.0 }
 0x130   :  { %244 = vrot.lane.b32.xlu1 %v236_v37, %s620_s28  ;;  %190 = vrot.lane.b32.xlu0 %v182_v38, %s619_s26 }
 0x134   :  { %271 = vrot.lane.b32.xlu1 %v263_v39, %s621_s29  ;;  %215 = vrot.lane.b32.xlu0 %v207_v25, %s618_s5 }
 0x138   :  { %242 = vrot.lane.b32.xlu0 %v234_v26, %s620_s28  ;;  %184 = vrot.lane.b32.xlu1 %v176_v27, %s619_s26 }
 0x13c   :  { %269 = vrot.lane.b32.xlu0 %v261_v29, %s621_s29  ;;  %186 = vrot.lane.b32.xlu1 %v178_v30, %s619_s26 }
 0x140   :  { %211 = vrot.lane.b32.xlu0 %v203_v31, %s618_s5  ;;  %213 = vrot.lane.b32.xlu1 %v205_v32, %s618_s5 }
 0x144   :  { %238 = vrot.lane.b32.xlu0 %v230_v33, %s620_s28  ;;  %240 = vrot.lane.b32.xlu1 %v232_v34, %s620_s28 }
 0x148   :  { %265 = vrot.lane.b32.xlu0 %v257_v35, %s621_s29  ;;  %267 = vrot.lane.b32.xlu1 %v259_v36, %s621_s29 }
 0x19e   :  { %v218_v46 = vpop.permute.xlu1 %217  ;;  %v189_v47 = vpop.permute.xlu0 %188 }
 0x19f   :  { %v198_v56 = vadd.f32 %v721_v4, %v189_v47 }
 0x1a2   :  { %v245_v48 = vpop.permute.xlu1 %244  ;;  %v191_v49 = vpop.permute.xlu0 %190 }
 0x1a3   :  { %v199_v50 = vadd.f32 %v726_v7, %v191_v49  ;;  %v296_v7 = vld [vmem:[#allocation7] sm:$0xff] }
 0x1a5   :  { %v226_v51 = vadd.f32 %v218_v46, %v199_v50 }
 0x1a6   :  { %v272_v52 = vpop.permute.xlu1 %271  ;;  %v216_v53 = vpop.permute.xlu0 %215 }
 0x1a7   :  { %v253_v54 = vadd.f32 %v245_v48, %v226_v51  ;;  %v225_v61 = vadd.f32 %v216_v53, %v198_v56 }
 0x1a9   :  { %v280_v57 = vadd.f32 %v272_v52, %v253_v54 }
 0x1aa   :  { %v243_v58 = vpop.permute.xlu0 %242  ;;  %v185_v59 = vpop.permute.xlu1 %184 }
 0x1ab   :  { %v291_v60 = vadd.f32 %v441_v55, %v280_v57  ;;  %v252_v62 = vadd.f32 %v243_v58, %v225_v61  ;;  %v196_v4 = vadd.f32 %v185_v59, %v723_v5 }
 0x1ad   :  { %v295_v1 = vmax.f32 %v291_v60, 0.0 }
 0x1ae   :  { %v270_v63 = vpop.permute.xlu0 %269  ;;  %v187_v0 = vpop.permute.xlu1 %186 }
 0x1af   :  { %v279_v2 = vadd.f32 %v270_v63, %v252_v62  ;;  %v301_v10 = vmul.f32 %v297_v3, %v295_v1  ;;  %v197_v14 = vadd.f32 %v187_v0, %v732_v12 }
 0x1b1   :  { %v290_v6 = vadd.f32 %v441_v55, %v279_v2  ;;  %v313_v20 = vsel %vm302_vm6, %v301_v10, -inf }
 0x1b2   :  { %v212_v8 = vpop.permute.xlu0 %211  ;;  %v214_v9 = vpop.permute.xlu1 %213 }
 0x1b3   :  { %v294_v11 = vmax.f32 %v290_v6, 0.0  ;;  %v223_v17 = vadd.f32 %v212_v8, %v196_v4  ;;  %v224_v18 = vadd.f32 %v214_v9, %v197_v14 }
 0x1b5   :  { %v300_v13 = vmul.f32 %v296_v7, %v294_v11 }
 0x1b6   :  { %v239_v15 = vpop.permute.xlu0 %238  ;;  %v241_v16 = vpop.permute.xlu1 %240 }
 0x1b7   :  { %v312_v19 = vsel %vm302_vm6, %v300_v13, -inf  ;;  %v250_v22 = vadd.f32 %v239_v15, %v223_v17  ;;  %v251_v23 = vadd.f32 %v241_v16, %v224_v18 }
 0x1b8   :  { %v314_v21 = vmax.f32 %v312_v19, %v313_v20 }
 0x1ba   :  { %v266_v24 = vpop.permute.xlu0 %265  ;;  %v268_v25 = vpop.permute.xlu1 %267  ;;  %v315_v26 = vrot.slane %v314_v21, 4 }
 0x1bb   :  { %v277_v27 = vadd.f32 %v266_v24, %v250_v22  ;;  %v278_v28 = vadd.f32 %v268_v25, %v251_v23 }
 0x1bc   :  { %v316_v5 = vmax.f32 %v314_v21, %v315_v26 }
 0x1bd   :  { %v288_v29 = vadd.f32 %v441_v55, %v277_v27  ;;  %v289_v30 = vadd.f32 %v441_v55, %v278_v28  ;;  %v442_v55 = vld [vmem:[%s797_s6] ss:$0 sm:$0xff] }
 0x1be   :  { %v317_v12 = vrot.slane %v316_v5, 2 }
 0x1bf   :  { %v292_v31 = vmax.f32 %v288_v29, 0.0  ;;  %v293_v32 = vmax.f32 %v289_v30, 0.0 }
 0x1c0   :  { %v318_v33 = vmax.f32 %v316_v5, %v317_v12 }
 0x1c1   :  { %v298_v34 = vmul.f32 %v296_v7, %v292_v31  ;;  %v299_v35 = vmul.f32 %v297_v3, %v293_v32 }
 0x1c2   :  { %v319_v39 = vrot.slane %v318_v33, 1 }
 0x1c3   :  { %v303_v36 = vsel %vm302_vm6, %v298_v34, -inf  ;;  %v304_v37 = vsel %vm302_vm6, %v299_v35, -inf }
 0x1c4   :  { %v305_v38 = vmax.f32 %v303_v36, %v304_v37  ;;  %v320_v43 = vmax.f32 %v318_v33, %v319_v39 }
 0x1c6   :  { %v306_v41 = vrot.slane %v305_v38, 4  ;;  %v327_v47 = vmul.f32 %v323_v44, %v320_v43 }
 0x1c8   :  { %v307_v42 = vmax.f32 %v305_v38, %v306_v41  ;;  %v329_v50 = vmul.f32 2.0, %v327_v47 }
 0x1ca   :  { %v308_v45 = vrot.slane %v307_v42, 2  ;;  %v342_v53 = vrot.slane %v329_v50, 7 }
 0x1cc   :  { %v309_v46 = vmax.f32 %v307_v42, %v308_v45 }
 0x1ce   :  { %v310_v48 = vrot.slane %v309_v46, 1 }
 0x1d0   :  { %v311_v49 = vmax.f32 %v309_v46, %v310_v48 }
 0x1d2   :  { %v326_v51 = vmul.f32 %v321_v40, %v311_v49 }
 0x1d4   :  { %v328_v52 = vmul.f32 2.0, %v326_v51 }
 0x1d6   :  { %v344_v54 = vsel %vm343_vm7, %v342_v53, %v328_v52 }
 0x1d7   :  { %467 = vmatmul.mubr.msk.f32.vlgmr.msra.gmra.mrb[0].mxu1 %vm302_vm6, %v344_v54 }
 0x2aa   :  { %v413_v56 = vpop.f32.mrb[0].mxu1 }
 0x2ab   :  { %v414_v57 = vadd.f32 %v442_v55, %v413_v56  ;;  %v468_v58 = vpop.f32.mrb[1].mxu1 }
 0x2ad   :  { %417 = vst [vmem:[#allocation10] sm:$0x3] %v414_v57 }
 0x2ae   :  { %591 = shalt.err (!%p588_p8)
}
 0x2af   :  { %s592_s13 = scalar_lea.hbm %s798_s7, 32 }
 0x2b0   :  { %p593_p9 = scmp.ne.s32.totalorder %s798_s7, %s592_s13  ;;  %p596_p10 = scmp.lt.u32.totalorder %s592_s13, %s798_s7 }
 0x2b2   :  { %p598_p11 = pnand %p596_p10, %p593_p9 }
 0x2b4   :  { %601 = shalt.err (!%p598_p11)
}
 0x2b5   :  { %427 = dma.vmem_to_hbm [thread:$0]  %s425_s12, 32, %s798_s7, [#allocation4]  }
 0x2b6   :  { %608 = dma.done.wait [#allocation4], 32  }
 0x2b7   :  { %609 = vsyncadd [#allocation4], 4294967264 }
 0x2b8   :  { %431 = vsyncpa [#allocation3], 1 }
 0x2b9   :  { %432 = vsyncpa [#allocation6], 1 }
 0x2ba   :  { %433 = vsyncpa [#allocation9], 1 }
 0x2bb   :  { %434 = vsyncpa [#allocation4], 1 }

</bundles_post_ra>
